<compile_context>
chip_gen: v7x
topology: tpu7x:2x2x1
jax: 0.10.0
libtpu: 0.0.40
codegen_flags: <defaults>
</compile_context>

<pallas_src>
import functools

import jax
import jax.numpy as jnp
from jax.experimental import pallas as pl
from jax.experimental.pallas import tpu as pltpu

_MiB = 1024 * 1024
_LANE = 128


def _vmem_capacity_bytes():
    try:
        return int(pltpu.get_tpu_info().vmem_capacity_bytes)
    except Exception:
        return 64 * _MiB  # assume the smallest generation (v7x) if unknown


def _budgets():
    cap = _vmem_capacity_bytes()
    if cap >= 96 * _MiB:
        # v5e / v6e: 128 MiB physical VMEM -> grow tiles, raise scoped limit.
        return {"vmem_limit": 64 * _MiB, "tile_bytes": 6 * _MiB}
    # v7x: 64 MiB physical VMEM -> cap tiles, leave headroom.
    return {"vmem_limit": 44 * _MiB, "tile_bytes": 4 * _MiB}


# ----------------------------- fused single pass -----------------------------

def _fused_kernel(x_ref, bias_ref, o_ref, *, inv_count):
    """x_ref: (N, c_blk, HW) resident in VMEM; bias_ref: (c_blk, 1)."""
    x = x_ref[...].astype(jnp.float32)
    s = jnp.sum(x, axis=0)                                   # (c_blk, HW) VPU adds
    mean = jnp.sum(s, axis=1, keepdims=True) * inv_count     # (c_blk, 1) XLU collapse
    shift = bias_ref[...].astype(jnp.float32) - mean         # (c_blk, 1)
    o_ref[...] = (x + shift[None, :, :]).astype(o_ref.dtype)


def _fused_c_block(N, C, HW, itemsize, budget):
    """Largest legal channel block whose (N, blk, HW) slab fits the budget."""
    def fits(blk):
        return N * blk * HW * itemsize <= budget

    if C % 16 == 0 and fits(C // 2):
        return C // 2                     # 2-way channel split when it's free
    if fits(C):
        return C                          # full-extent block is always legal
    for blk in range((C // 8) * 8, 0, -8):  # multiples of 8 dividing C
        if C % blk == 0 and fits(blk):
            return blk
    return None


# ------------------------------ two-pass kernels -----------------------------

def _mean_shift_kernel(x_ref, bias_ref, shift_ref, acc_ref, *,
                       hw_tile, hw_total, inv_count, needs_mask):
    """Grid = (c_blocks [parallel], N [arbitrary], hw_blocks [arbitrary])."""
    n = pl.program_id(1)
    j = pl.program_id(2)
    last_n = pl.num_programs(1) - 1
    last_j = pl.num_programs(2) - 1

    @pl.when(jnp.logical_and(n == 0, j == 0))
    def _():
        acc_ref[...] = jnp.zeros_like(acc_ref)

    x = x_ref[...].astype(jnp.float32)                       # (c_blk, hw_tile)
    if needs_mask:
        # Only the tail hw block has padded (unspecified) lanes; gate the
        # iota + select so interior blocks stay one VPU add per element.
        @pl.when(j == last_j)
        def _():
            lane = jax.lax.broadcasted_iota(jnp.int32, x.shape, dimension=1)
            acc_ref[...] += jnp.where(j * hw_tile + lane < hw_total, x, 0.0)

        @pl.when(j != last_j)
        def _():
            acc_ref[...] += x
    else:
        acc_ref[...] += x

    @pl.when(jnp.logical_and(n == last_n, j == last_j))
    def _():
        mean = jnp.sum(acc_ref[...], axis=1, keepdims=True) * inv_count
        shift_ref[...] = bias_ref[...].astype(jnp.float32) - mean


def _apply_kernel(x_ref, shift_ref, o_ref):
    """out = x + (bias - mean)[c]; add in f32, one rounding on the store."""
    o_ref[...] = (x_ref[...].astype(jnp.float32) + shift_ref[...]).astype(o_ref.dtype)


# --------------------------------- wrapper -----------------------------------

def mean_only_batchnorm(x_nchw, bias, *, donate_x=False,
                        target_tile_bytes=None, max_fused_slab_bytes=None):
    """x_nchw: (N, C, H, W); bias: (C,). Returns (N, C, H, W)."""
    N, C, H, W = x_nchw.shape
    HW = H * W
    x3 = x_nchw.reshape(N, C, HW)          # free reshape, native layout
    bias2d = bias.reshape(C, 1)
    itemsize = x3.dtype.itemsize
    inv_count = 1.0 / float(N * HW)

    budgets = _budgets()
    vmem_limit = budgets["vmem_limit"]
    tile_bytes = (target_tile_bytes if target_tile_bytes is not None
                  else budgets["tile_bytes"])
    fused_budget = (max_fused_slab_bytes if max_fused_slab_bytes is not None
                    else vmem_limit // 8)   # headroom for in/out double-buffers + f32 temps
    io_alias = {0: 0} if donate_x else {}

    # ---- Fused single-pass path (x streams once in, once out) ----
    fused_c = _fused_c_block(N, C, HW, itemsize, fused_budget)
    if fused_c is not None:
        n_c = C // fused_c
        slab_spec = pl.BlockSpec((N, fused_c, HW), lambda c: (0, c, 0))
        out3 = pl.pallas_call(
            functools.partial(_fused_kernel, inv_count=inv_count),
            out_shape=jax.ShapeDtypeStruct((N, C, HW), x3.dtype),
            grid_spec=pltpu.PrefetchScalarGridSpec(
                num_scalar_prefetch=0,
                grid=(n_c,),
                in_specs=[slab_spec,
                          pl.BlockSpec((fused_c, 1), lambda c: (c, 0))],
                out_specs=slab_spec,
            ),
            compiler_params=pltpu.CompilerParams(
                dimension_semantics=("parallel",),
                vmem_limit_bytes=vmem_limit,
            ),
            input_output_aliases=io_alias,
        )(x3, bias2d)
        return out3.reshape(N, C, H, W)

    # ---- Two-pass fallback (large x) ----
    # Channel blocking: give the reduction pass a parallel axis whenever legal.
    if C % 16 == 0:
        c_blk = C // 2
    elif C % 8 == 0 and C > 8:
        c_blk = 8
    else:
        c_blk = C
        # TODO(synk): for small/odd C, split the reduction over N/HW into
        # per-core partial sums so v7x's second TensorCore participates; the
        # fused path above usually covers those shapes already.
    n_c = C // c_blk

    # Lane-axis (H*W) tiling: multiple of 128 (or full dim), byte-capped, and
    # balanced so the tail block is not nearly empty.
    max_lanes = max(_LANE, (tile_bytes // (c_blk * itemsize)) // _LANE * _LANE)
    if HW <= max_lanes:
        hw_tile = HW                       # single lane block, no mask
    else:
        n_blocks = pl.cdiv(HW, max_lanes)
        hw_tile = ((pl.cdiv(HW, n_blocks) + _LANE - 1) // _LANE) * _LANE
    n_hw = pl.cdiv(HW, hw_tile)
    needs_mask = (HW % hw_tile) != 0

    grid = (n_c, N, n_hw)
    x_spec = pl.BlockSpec((None, c_blk, hw_tile), lambda c, n, j: (n, c, j))
    vec_spec = pl.BlockSpec((c_blk, 1), lambda c, n, j: (c, 0))

    # Pass 1: per-channel mean over (N, H*W); epilogue emits shift = bias - mean.
    shift = pl.pallas_call(
        functools.partial(
            _mean_shift_kernel,
            hw_tile=hw_tile,
            hw_total=HW,
            inv_count=inv_count,
            needs_mask=needs_mask,
        ),
        out_shape=jax.ShapeDtypeStruct((C, 1), jnp.float32),
        grid_spec=pltpu.PrefetchScalarGridSpec(
            num_scalar_prefetch=0,
            grid=grid,
            in_specs=[x_spec, vec_spec],
            out_specs=vec_spec,
            scratch_shapes=[pltpu.VMEM((c_blk, hw_tile), jnp.float32)],
        ),
        compiler_params=pltpu.CompilerParams(
            dimension_semantics=("parallel", "arbitrary", "arbitrary"),
            vmem_limit_bytes=vmem_limit,
        ),
    )(x3, bias2d)

    # Pass 2: out = x + shift[c]; f32 add, lane-dense output, fully parallel.
    out3 = pl.pallas_call(
        _apply_kernel,
        out_shape=jax.ShapeDtypeStruct((N, C, HW), x3.dtype),
        grid_spec=pltpu.PrefetchScalarGridSpec(
            num_scalar_prefetch=0,
            grid=grid,
            in_specs=[x_spec, vec_spec],
            out_specs=pl.BlockSpec((None, c_blk, hw_tile), lambda c, n, j: (n, c, j)),
        ),
        compiler_params=pltpu.CompilerParams(
            dimension_semantics=("parallel", "parallel", "parallel"),
            vmem_limit_bytes=vmem_limit,
        ),
        input_output_aliases=io_alias,
    )(x3, shift)

    return out3.reshape(N, C, H, W)


def _reference(x, bias):
    xf = x.astype(jnp.float32)
    mean = jnp.mean(xf, axis=(0, 2, 3), keepdims=True)
    return xf - mean + bias.reshape(1, -1, 1, 1).astype(jnp.float32)


if __name__ == "__main__":
    key = jax.random.PRNGKey(0)
    k1, k2, k3, k4 = jax.random.split(key, 4)

    # Case 1: module-sized shapes (batch=2, channels=4, spatial=16) -> fused path.
    N, C, H, W = 2, 4, 16, 16
    x = jax.random.normal(k1, (N, C, H, W), dtype=jnp.float32)
    bias = jnp.zeros((C,), dtype=jnp.float32)   # module zeros the bias parameter
    out = jax.block_until_ready(mean_only_batchnorm(x, bias))
    assert out.shape == (N, C, H, W) and out.dtype == x.dtype
    assert jnp.allclose(out, _reference(x, bias), atol=1e-5, rtol=1e-5)

    # Case 2: fused path with a 2-way parallel channel split (C % 16 == 0).
    x2 = jax.random.normal(k2, (2, 16, 16, 16), dtype=jnp.float32)
    bias2 = jnp.linspace(-1.0, 1.0, 16, dtype=jnp.float32)
    out2 = jax.block_until_ready(mean_only_batchnorm(x2, bias2))
    assert jnp.allclose(out2, _reference(x2, bias2), atol=1e-5, rtol=1e-5)

    # Case 3: force the two-pass fallback with a ragged H*W (tail-lane masking).
    x3 = jax.random.normal(k3, (2, 8, 20, 20), dtype=jnp.float32)
    bias3 = jnp.linspace(-0.5, 0.5, 8, dtype=jnp.float32)
    out3 = jax.block_until_ready(
        mean_only_batchnorm(x3, bias3, target_tile_bytes=1024,
                            max_fused_slab_bytes=0))
    assert jnp.allclose(out3, _reference(x3, bias3), atol=1e-5, rtol=1e-5)

    # Case 4: bf16 input -- apply-add happens in f32, one rounding on store.
    x4 = jax.random.normal(k4, (2, 16, 16, 16), dtype=jnp.bfloat16)
    bias4 = jnp.linspace(-1.0, 1.0, 16, dtype=jnp.float32)
    out4 = jax.block_until_ready(mean_only_batchnorm(x4, bias4))
    assert out4.dtype == jnp.bfloat16
    assert jnp.allclose(out4.astype(jnp.float32), _reference(x4, bias4), atol=0.1)

    print("KERNEL_OK")
</pallas_src>

<mosaic_0001>
module attributes {stable_mosaic.version = 11 : i64} {
  func.func @_fused_kernel(%arg0: i32, %arg1: memref<2x4x256xf32, #tpu.memory_space<vmem>>, %arg2: memref<4x1xf32, #tpu.memory_space<vmem>>, %arg3: memref<2x4x256xf32, #tpu.memory_space<vmem>>) attributes {dimension_semantics = [#tpu.dimension_semantics<parallel>], iteration_bounds = array<i64: 1>, scalar_prefetch = 0 : i64, scratch_operands = 0 : i64, tpu.core_type = #tpu.core_type<tc>, window_params = [{transform_indices = @transform_0, window_bounds = array<i64: 2, 4, 256>}, {transform_indices = @transform_1, window_bounds = array<i64: 4, 1>}, {transform_indices = @transform_2, window_bounds = array<i64: 2, 4, 256>}]} {
    %c0 = arith.constant 0 : index
    %c0_0 = arith.constant 0 : index
    %c0_1 = arith.constant 0 : index
    %0 = vector.load %arg1[%c0, %c0_0, %c0_1] : memref<2x4x256xf32, #tpu.memory_space<vmem>>, vector<2x4x256xf32>
    %cst = arith.constant dense<0.000000e+00> : vector<4x256xf32>
    %1 = vector.multi_reduction <add>, %0, %cst [0] : vector<2x4x256xf32> to vector<4x256xf32>
    %cst_2 = arith.constant dense<0.000000e+00> : vector<4xf32>
    %2 = vector.multi_reduction <add>, %1, %cst_2 [1] : vector<4x256xf32> to vector<4xf32>
    %3 = vector.shape_cast %2 : vector<4xf32> to vector<4x1xf32>
    %cst_3 = arith.constant 0.001953125 : f32
    %4 = vector.broadcast %cst_3 : f32 to vector<4x1xf32>
    %5 = arith.mulf %3, %4 : vector<4x1xf32>
    %c0_4 = arith.constant 0 : index
    %c0_5 = arith.constant 0 : index
    %6 = vector.load %arg2[%c0_4, %c0_5] : memref<4x1xf32, #tpu.memory_space<vmem>>, vector<4x1xf32>
    %7 = arith.subf %6, %5 : vector<4x1xf32>
    %8 = vector.shape_cast %7 : vector<4x1xf32> to vector<1x4x1xf32>
    %9 = vector.broadcast %8 : vector<1x4x1xf32> to vector<2x4x256xf32>
    %10 = arith.addf %0, %9 : vector<2x4x256xf32>
    %c0_6 = arith.constant 0 : index
    %c0_7 = arith.constant 0 : index
    %c0_8 = arith.constant 0 : index
    %11 = vector.load %arg3[%c0_6, %c0_7, %c0_8] : memref<2x4x256xf32, #tpu.memory_space<vmem>>, vector<2x4x256xf32>
    tpu.vector_store %arg3[%c0_6, %c0_7, %c0_8], %10 {strides = array<i32>} : memref<2x4x256xf32, #tpu.memory_space<vmem>>, vector<2x4x256xf32>,
    return
  }
  func.func @transform_0(%arg0: i32) -> (i32, i32, i32) {
    %c0_i32 = arith.constant 0 : i32
    %c0_i32_0 = arith.constant 0 : i32
    %c0_i32_1 = arith.constant 0 : i32
    return %c0_i32, %arg0, %c0_i32_0 : i32, i32, i32
  }
  func.func @transform_1(%arg0: i32) -> (i32, i32) {
    %c0_i32 = arith.constant 0 : i32
    %c0_i32_0 = arith.constant 0 : i32
    return %arg0, %c0_i32 : i32, i32
  }
  func.func @transform_2(%arg0: i32) -> (i32, i32, i32) {
    %c0_i32 = arith.constant 0 : i32
    %c0_i32_0 = arith.constant 0 : i32
    %c0_i32_1 = arith.constant 0 : i32
    return %c0_i32, %arg0, %c0_i32_0 : i32, i32, i32
  }
}

</mosaic_0001>

<bundles_post_ra>
// kernel: tpu_custom_call.1
= control target key start
LH: loop header
LB: loop body
LE: loop exit
PB: predicated region body
PF: predicated region fallthrough
CT: control target
= control target key end

     0   :  { %7 = vsyncpa [#allocation3], 0  ;;  %s193_s0 = inlined_call_operand.hbm [shape: f32[2,4,256], index: 0, kind: input, shape index: {}]   ;;  %s194_s1 = inlined_call_operand.vmem [shape: f32[4,1], index: 1, kind: input, shape index: {}]   ;;  %s195_s2 = inlined_call_operand.hbm [shape: f32[2,4,256], index: 2, kind: output, shape index: {}]  }
   0x1   :  { %8 = vsyncpa [#allocation4], 0  ;;  %s139_s9 = smov [#allocation2]   ;;  %s91_s13 = scalar_lea.hbm %s193_s0, 256 }
   0x2   :  { %s14_s10 = sshll.u32 %s139_s9, 4  ;;  %p92_p0 = scmp.ne.s32.totalorder %s193_s0, %s91_s13  ;;  %s15_s10 = int_to_ptr.vmem [resolvable:$true] %s14_s10 }
   0x3   :  { %p95_p1 = scmp.lt.u32.totalorder %s91_s13, %s193_s0 }
   0x5   :  { %p97_p2 = pnand %p95_p1, %p92_p0 }
   0x7   :  { %100 = shalt.err (!%p97_p2)
}
   0x8   :  { %s101_s18 = scalar_lea.vmem %s15_s10, 256  ;;  %p106_p4 = scmp.lt.s32.totalorder %s15_s10, %s15_s10 }
   0x9   :  { %p102_p3 = scmp.ne.s32.totalorder %s15_s10, %s101_s18  ;;  %p107_p5 = scmp.lt.s32.totalorder %s101_s18, %s101_s18 }
   0xb   :  { %p108_p6 = por %p107_p5, %p106_p4 }
   0xd   :  { %p109_p7 = pnand %p108_p6, %p102_p3 }
   0xf   :  { %112 = shalt.err (!%p109_p7)
}
  0x10   :  { %s140_s19 = smov 128   ;;  %s141_s20 = smov 8  }
  0x11   :  { %20 = dma.hbm_to_vmem [thread:$0]  %s193_s0, 256, %s15_s10, [#allocation3], %s140_s19, %s140_s19, %s141_s20  }
  0x12   :  { %135 = dma.done.wait [#allocation3], 256  }
  0x13   :  { %136 = vsyncadd [#allocation3], 4294967040  ;;  %vm34_vm0 = vcmask 1043456   ;;  %v26_v0 = vld [vmem:[#allocation2] sm:$0xff]  ;;  %v27_v1 = vld [vmem:[#allocation2 + $0x8] sm:$0xff]  ;;  %v142_v13 = vmov 0   ;;  %v56_v20 = vlaneseq }
  0x14   :  { %v30_v2 = vcombine.high %v26_v0, %v26_v0  ;;  %v31_v3 = vcombine.high %v27_v1, %v27_v1  ;;  %v35_v4 = vsel %vm34_vm0, %v26_v0, 0.0  ;;  %v36_v5 = vsel %vm34_vm0, %v27_v1, 0.0  ;;  %88 = vset.pattern.permute.xlu0 %v142_v13  ;;  %v47_v14 = vld [vmem:[%s194_s1] sm:$0xf]  ;;  %s144_s24 = smov [#allocation5]  }
  0x15   :  { %v37_v6 = vadd.f32 %v36_v5, %v35_v4  ;;  %v143_v18 = vmov 839922192   ;;  %v57_v22 = vshrl.u32 %v56_v20, 7  ;;  %s70_s25 = sshll.u32 %s144_s24, 4  ;;  %s71_s25 = int_to_ptr.vmem [resolvable:$true] %s70_s25 }
  0x16   :  { %v38_v7 = vsel %vm34_vm0, %v30_v2, 0.0  ;;  %v39_v8 = vsel %vm34_vm0, %v31_v3, 0.0  ;;  %v54_v19 = vunpack.c.l.s4 %v143_v18  ;;  %s113_s1 = scalar_lea.vmem %s71_s25, 256  ;;  %p118_p9 = scmp.lt.s32.totalorder %s71_s25, %s71_s25 }
  0x17   :  { %v40_v9 = vadd.f32 %v39_v8, %v38_v7  ;;  %v41_v10 = vsel %vm34_vm0, %v37_v6, 0.0  ;;  %p114_p8 = scmp.ne.s32.totalorder %s71_s25, %s113_s1  ;;  %p119_p10 = scmp.lt.s32.totalorder %s113_s1, %s113_s1 }
  0x18   :  { %v55_v21 = vunpack.c.0.s8 %v54_v19 }
  0x19   :  { %v42_v11 = vsel %vm34_vm0, %v40_v9, 0.0  ;;  %p120_p11 = por %p119_p10, %p118_p9 }
  0x1a   :  { %v43_v12 = vadd.f32 %v42_v11, %v41_v10  ;;  %v58_v23 = vsub.s32 %v55_v21, %v57_v22 }
  0x1b   :  { %p121_p12 = pnand %p120_p11, %p114_p8 }
  0x1c   :  { %44 = vadd.xlane.f32.xlu0 %v43_v12 }
  0xa9   :  { %v45_v15 = vpop.xlane.xlu0 %44 }
  0xaa   :  { %v46_v16 = vmul.f32 0.001953125, %v45_v15 }
  0xac   :  { %v48_v17 = vsub.f32 %v47_v14, %v46_v16 }
  0xae   :  { %51 = vperm.xlu0 %88, %v48_v17  }
 0x12d   :  { %v52_v24 = vpop.permute.xlu0 %51 }
 0x12e   :  { %v59_v25 = vrot.slane %v52_v24, %v58_v23 }
 0x130   :  { %v61_v26 = vadd.f32 %v59_v25, %v26_v0  ;;  %v62_v27 = vadd.f32 %v59_v25, %v27_v1 }
 0x132   :  { %63 = vst [vmem:[#allocation5] sm:$0xff] %v61_v26  ;;  %64 = vst [vmem:[#allocation5 + $0x8] sm:$0xff] %v62_v27 }
 0x133   :  { %124 = shalt.err (!%p121_p12)
}
 0x134   :  { %s125_s28 = scalar_lea.hbm %s195_s2, 256 }
 0x135   :  { %p126_p13 = scmp.ne.s32.totalorder %s195_s2, %s125_s28  ;;  %p129_p0 = scmp.lt.u32.totalorder %s125_s28, %s195_s2 }
 0x137   :  { %p131_p1 = pnand %p129_p0, %p126_p13 }
 0x139   :  { %134 = shalt.err (!%p131_p1)
}
 0x13a   :  { %76 = dma.vmem_to_hbm [thread:$0]  %s71_s25, 256, %s195_s2, [#allocation4], %s140_s19, %s140_s19, %s141_s20  }
 0x13b   :  { %137 = dma.done.wait [#allocation4], 256  }
 0x13c   :  { %138 = vsyncadd [#allocation4], 4294967040 }
 0x13d   :  { %80 = vsyncpa [#allocation3], 1 }
 0x13e   :  { %81 = vsyncpa [#allocation4], 1 }

</bundles_post_ra>
